<compile_context>
chip_gen: v7x
topology: tpu7x:2x2x1
jax: 0.10.0
libtpu: 0.0.40
codegen_flags: <defaults>
</compile_context>

<pallas_src>
import functools

import jax
import jax.numpy as jnp
from jax import lax
from jax.experimental import pallas as pl
from jax.experimental.pallas import tpu as pltpu


def _block_elem_budget():
    """Per-input block budget in f32 elements (generation-aware, conservative).

    2 input streams x 2 pipeline buffers x block must stay well inside the
    default scoped-VMEM limit of each generation (v5e 16 MiB, v6e/v7x 32 MiB).
    """
    try:
        kind = jax.devices()[0].device_kind.lower()
    except Exception:  # pragma: no cover - interpret / exotic backends
        kind = ""
    if "v6" in kind:
        return 1 << 20          # 4 MiB blocks -> ~16 MiB double-buffered
    if "v5" in kind:
        return 1 << 19          # 2 MiB blocks -> ~8 MiB (fits 16 MiB default)
    return 3 * (1 << 18)        # ~3 MiB blocks (v7x: 64 MiB physical VMEM)


def _choose_layout(N, max_block_elems):
    """Factor the per-frame flat size N into a (R, L) view plus a row block.

    Returns (R, L, r_blk) with N == R * L such that the (1, r_blk, L)
    BlockSpec is always tiling-legal:
      * L is a multiple of 128 dividing N (or L == N as the fallback),
      * r_blk divides R and is a multiple of 8 OR equals R,
      * r_blk * L <= max_block_elems whenever such a choice exists.
    Preference: fitting blocks > bigger blocks > denser sublanes.
    """
    def rank(r_blk, L):
        block = r_blk * L
        fits = block <= max_block_elems
        return (fits, block if fits else -block, min(r_blk, 8), L)

    # Guaranteed-legal fallback: one (1, 1, N) block per frame.
    best_key, best = rank(1, N), (1, N, 1)

    if N % 128 == 0:
        m = N // 128
        lane_divs = set()
        d = 1
        while d * d <= m:
            if m % d == 0:
                lane_divs.update((d, m // d))
            d += 1
        for lm in sorted(lane_divs):
            L = lm * 128
            R = N // L
            rdivs = set()
            e = 1
            while e * e <= R:
                if R % e == 0:
                    rdivs.update((e, R // e))
                e += 1
            for r_blk in rdivs:
                if r_blk != R and r_blk % 8 != 0:
                    continue                    # keep tiles sublane-aligned
                key = rank(r_blk, L)
                if key > best_key:
                    best_key, best = key, (R, L, r_blk)
    # TODO(synk): frames whose only legal chunking exceeds the budget (e.g.
    # N = 128 * huge prime) fall back to one whole-frame block per step.
    return best


def _make_kernel(H, W, bsz, L, r_blk, scale):
    """Build the kernel body; all shape/mask parameters are compile-time."""
    w_pow2 = W > 0 and (W & (W - 1)) == 0
    h_pow2 = H > 0 and (H & (H - 1)) == 0

    def div_mod(x, d, is_pow2):
        if is_pow2:
            shift = d.bit_length() - 1
            return x >> shift, x & (d - 1)
        return x // d, x % d

    def kernel(gt_ref, est_ref, out_ref):
        b = pl.program_id(0)
        j = pl.program_id(1)

        @pl.when(jnp.logical_and(b == 0, j == 0))
        def _():
            out_ref[0, 0] = jnp.float32(0.0)

        gt = gt_ref[0].astype(jnp.float32)       # (r_blk, L)
        est = est_ref[0].astype(jnp.float32)

        # Rebuild the valid-center mask from the within-frame flat index:
        #   flat = c*H*W + h*W + w   ->   w = flat % W, h = (flat // W) % H
        rows = lax.broadcasted_iota(jnp.int32, (r_blk, L), 0) + j * r_blk
        cols = lax.broadcasted_iota(jnp.int32, (r_blk, L), 1)
        flat = rows * L + cols
        hw, w = div_mod(flat, W, w_pow2)
        _, h = div_mod(hw, H, h_pow2)
        valid = ((h >= bsz) & (h < H - bsz) & (w >= bsz) & (w < W - bsz))

        # |gt*m - est*m| == |gt - est| on the valid region, 0 elsewhere.
        out_ref[0, 0] += jnp.sum(jnp.where(valid, jnp.abs(gt - est), 0.0))

        @pl.when(jnp.logical_and(b == pl.num_programs(0) - 1,
                                 j == pl.num_programs(1) - 1))
        def _():
            out_ref[0, 0] = out_ref[0, 0] * jnp.float32(scale)

    return kernel


def loss_simple_rlsp(output_frames_original, model_output, non_valid_border_size=2):
    """Returns (total_loss, valid_mask) like Loss_Simple_RLSP.forward."""
    B, T, C, H, W = output_frames_original.shape
    assert model_output.shape == (B, C, H, W), (model_output.shape, (B, C, H, W))
    bsz = int(non_valid_border_size)
    N = C * H * W

    R, L, r_blk = _choose_layout(N, _block_elem_budget())
    assert R * L == N and R % r_blk == 0
    cpf = R // r_blk                       # chunks per frame (grid axis 1)

    # Free reshapes; the last frame is selected purely via the index_map.
    gt_src = output_frames_original.reshape(B * T, R, L)
    est_src = model_output.reshape(B, R, L)

    # sum(mask) is a compile-time constant -> fold 100/count into the kernel.
    count = B * C * max(H - 2 * bsz, 0) * max(W - 2 * bsz, 0)
    # (count == 0 reproduces the torch 0/0 -> nan behaviour.)
    scale = 100.0 / count if count > 0 else float("nan")

    kernel = _make_kernel(H, W, bsz, L, r_blk, scale)

    gt_spec = pl.BlockSpec((1, r_blk, L), lambda b, j: (b * T + (T - 1), j, 0))
    est_spec = pl.BlockSpec((1, r_blk, L), lambda b, j: (b, j, 0))
    out_spec = pl.BlockSpec(memory_space=pltpu.MemorySpace.SMEM)

    itemsize = jnp.dtype(model_output.dtype).itemsize
    cost = pl.CostEstimate(
        flops=8 * B * N,
        transcendentals=0,
        bytes_accessed=2 * B * N * itemsize + 4,
    )

    total = pl.pallas_call(
        kernel,
        out_shape=jax.ShapeDtypeStruct((1, 1), jnp.float32),
        grid_spec=pltpu.PrefetchScalarGridSpec(
            num_scalar_prefetch=0,
            grid=(B, cpf),
            in_specs=[gt_spec, est_spec],
            out_specs=out_spec,
        ),
        compiler_params=pltpu.CompilerParams(
            dimension_semantics=("arbitrary", "arbitrary"),
            vmem_limit_bytes=32 * 1024 * 1024),
        cost_estimate=cost,
    )(gt_src, est_src)

    total_loss = total[0, 0]

    # valid_mask bookkeeping of forward() (outputs_dict.valid_mask), bool.
    h_idx = jnp.arange(H)
    w_idx = jnp.arange(W)
    valid_hw = ((h_idx[:, None] >= bsz) & (h_idx[:, None] < H - bsz) &
                (w_idx[None, :] >= bsz) & (w_idx[None, :] < W - bsz))
    valid_mask = jnp.broadcast_to(valid_hw[None, None], (B, C, H, W))

    # TODO(synk): outputs_dict / inputs_dict bookkeeping of forward() is
    # Python glue; only (total_loss, valid_mask) are materialized here.
    return total_loss, valid_mask


if __name__ == "__main__":
    # Small shapes consistent with the module: B=2, T=5, C=3, H=W=16
    B, T, C, H, W = 2, 5, 3, 16, 16
    border = 2

    key = jax.random.PRNGKey(0)
    k1, k2 = jax.random.split(key)
    output_frames_original = jax.random.normal(k1, (B, T, C, H, W), jnp.float32)
    model_output = jax.random.normal(k2, (B, C, H, W), jnp.float32)

    loss_fn = jax.jit(functools.partial(loss_simple_rlsp,
                                        non_valid_border_size=border))
    total_loss, valid_mask = loss_fn(output_frames_original, model_output)
    total_loss = jax.block_until_ready(total_loss)

    # Pure-JAX reference (mirrors MaskedL1Loss * 100 on the last frame).
    gt = output_frames_original[:, -1]
    mask_f = valid_mask.astype(jnp.float32)
    ref = 100.0 * jnp.sum(jnp.abs(gt * mask_f - model_output * mask_f)) / jnp.sum(mask_f)
    assert jnp.allclose(total_loss, ref, rtol=1e-4, atol=1e-4), (total_loss, ref)

    print("KERNEL_OK")
</pallas_src>

<mosaic_0001>
module attributes {stable_mosaic.version = 11 : i64} {
  func.func @kernel(%arg0: i32, %arg1: i32, %arg2: memref<1x6x128xf32, #tpu.memory_space<vmem>>, %arg3: memref<1x6x128xf32, #tpu.memory_space<vmem>>, %arg4: memref<1x1xf32, #tpu.memory_space<smem>>) attributes {dimension_semantics = [#tpu.dimension_semantics<arbitrary>, #tpu.dimension_semantics<arbitrary>], iteration_bounds = array<i64: 2, 1>, scalar_prefetch = 0 : i64, scratch_operands = 0 : i64, tpu.core_type = #tpu.core_type<tc>, window_params = [{transform_indices = @transform_0, window_bounds = array<i64: 1, 6, 128>}, {transform_indices = @transform_1, window_bounds = array<i64: 1, 6, 128>}, {transform_indices = @transform_2, window_bounds = array<i64: 1, 1>}]} {
    %c0_i32 = arith.constant 0 : i32
    %0 = arith.cmpi eq, %arg0, %c0_i32 : i32
    %c0_i32_0 = arith.constant 0 : i32
    %1 = arith.cmpi eq, %arg1, %c0_i32_0 : i32
    %2 = arith.andi %0, %1 : i1
    %3 = arith.extui %2 : i1 to i32
    %c0_i32_1 = arith.constant 0 : i32
    %4 = arith.cmpi ne, %3, %c0_i32_1 : i32
    scf.if %4 {
      %cst_17 = arith.constant 0.000000e+00 : f32
      %c0_18 = arith.constant 0 : index
      %c0_19 = arith.constant 0 : index
      %50 = memref.load %arg4[%c0_18, %c0_19] : memref<1x1xf32, #tpu.memory_space<smem>>
      memref.store %cst_17, %arg4[%c0_18, %c0_19] : memref<1x1xf32, #tpu.memory_space<smem>>
    } else {
    }
    %c0 = arith.constant 0 : index
    %c0_2 = arith.constant 0 : index
    %c0_3 = arith.constant 0 : index
    %5 = vector.load %arg2[%c0, %c0_2, %c0_3] : memref<1x6x128xf32, #tpu.memory_space<vmem>>, vector<1x6x128xf32>
    %6 = vector.shape_cast %5 : vector<1x6x128xf32> to vector<6x128xf32>
    %c0_4 = arith.constant 0 : index
    %c0_5 = arith.constant 0 : index
    %c0_6 = arith.constant 0 : index
    %7 = vector.load %arg3[%c0_4, %c0_5, %c0_6] : memref<1x6x128xf32, #tpu.memory_space<vmem>>, vector<1x6x128xf32>
    %8 = vector.shape_cast %7 : vector<1x6x128xf32> to vector<6x128xf32>
    %9 = tpu.iota {dimensions = array<i32: 0>} : vector<6x128xi32>
    %c6_i32 = arith.constant 6 : i32
    %10 = arith.muli %arg1, %c6_i32 : i32
    %11 = vector.broadcast %10 : i32 to vector<6x128xi32>
    %12 = arith.addi %9, %11 : vector<6x128xi32>
    %13 = tpu.iota {dimensions = array<i32: 1>} : vector<6x128xi32>
    %c128_i32 = arith.constant 128 : i32
    %14 = vector.broadcast %c128_i32 : i32 to vector<6x128xi32>
    %15 = arith.muli %12, %14 : vector<6x128xi32>
    %16 = arith.addi %15, %13 : vector<6x128xi32>
    %c4_i32 = arith.constant 4 : i32
    %17 = vector.broadcast %c4_i32 : i32 to vector<6x128xi32>
    %18 = arith.shrsi %16, %17 : vector<6x128xi32>
    %c15_i32 = arith.constant 15 : i32
    %19 = vector.broadcast %c15_i32 : i32 to vector<6x128xi32>
    %20 = arith.andi %16, %19 : vector<6x128xi32>
    %c15_i32_7 = arith.constant 15 : i32
    %21 = vector.broadcast %c15_i32_7 : i32 to vector<6x128xi32>
    %22 = arith.andi %18, %21 : vector<6x128xi32>
    %c2_i32 = arith.constant 2 : i32
    %23 = vector.broadcast %c2_i32 : i32 to vector<6x128xi32>
    %24 = arith.cmpi sge, %22, %23 : vector<6x128xi32>
    %c14_i32 = arith.constant 14 : i32
    %25 = vector.broadcast %c14_i32 : i32 to vector<6x128xi32>
    %26 = arith.cmpi slt, %22, %25 : vector<6x128xi32>
    %27 = arith.andi %24, %26 : vector<6x128xi1>
    %c2_i32_8 = arith.constant 2 : i32
    %28 = vector.broadcast %c2_i32_8 : i32 to vector<6x128xi32>
    %29 = arith.cmpi sge, %20, %28 : vector<6x128xi32>
    %30 = arith.andi %27, %29 : vector<6x128xi1>
    %c14_i32_9 = arith.constant 14 : i32
    %31 = vector.broadcast %c14_i32_9 : i32 to vector<6x128xi32>
    %32 = arith.cmpi slt, %20, %31 : vector<6x128xi32>
    %33 = arith.andi %30, %32 : vector<6x128xi1>
    %c0_10 = arith.constant 0 : index
    %c0_11 = arith.constant 0 : index
    %34 = memref.load %arg4[%c0_10, %c0_11] : memref<1x1xf32, #tpu.memory_space<smem>>
    %35 = arith.subf %6, %8 : vector<6x128xf32>
    %36 = math.absf %35 : vector<6x128xf32>
    %cst = arith.constant 0.000000e+00 : f32
    %37 = vector.broadcast %cst : f32 to vector<6x128xf32>
    %38 = arith.select %33, %36, %37 : vector<6x128xi1>, vector<6x128xf32>
    %39 = vector.shape_cast %38 : vector<6x128xf32> to vector<1x6x128xf32>
    %cst_12 = arith.constant dense<0.000000e+00> : vector<1xf32>
    %40 = vector.multi_reduction <add>, %39, %cst_12 [1, 2] : vector<1x6x128xf32> to vector<1xf32>
    %41 = vector.shape_cast %40 : vector<1xf32> to vector<1x1x1xf32>
    %42 = vector.extract %41[0, 0, 0] : f32 from vector<1x1x1xf32>
    %43 = arith.addf %34, %42 : f32
    %c0_13 = arith.constant 0 : index
    %c0_14 = arith.constant 0 : index
    %44 = memref.load %arg4[%c0_13, %c0_14] : memref<1x1xf32, #tpu.memory_space<smem>>
    memref.store %43, %arg4[%c0_13, %c0_14] : memref<1x1xf32, #tpu.memory_space<smem>>
    %c1_i32 = arith.constant 1 : i32
    %45 = arith.cmpi eq, %arg0, %c1_i32 : i32
    %c0_i32_15 = arith.constant 0 : i32
    %46 = arith.cmpi eq, %arg1, %c0_i32_15 : i32
    %47 = arith.andi %45, %46 : i1
    %48 = arith.extui %47 : i1 to i32
    %c0_i32_16 = arith.constant 0 : i32
    %49 = arith.cmpi ne, %48, %c0_i32_16 : i32
    scf.if %49 {
      %c0_17 = arith.constant 0 : index
      %c0_18 = arith.constant 0 : index
      %50 = memref.load %arg4[%c0_17, %c0_18] : memref<1x1xf32, #tpu.memory_space<smem>>
      %cst_19 = arith.constant 0.115740739 : f32
      %51 = arith.mulf %50, %cst_19 : f32
      %c0_20 = arith.constant 0 : index
      %c0_21 = arith.constant 0 : index
      %52 = memref.load %arg4[%c0_20, %c0_21] : memref<1x1xf32, #tpu.memory_space<smem>>
      memref.store %51, %arg4[%c0_20, %c0_21] : memref<1x1xf32, #tpu.memory_space<smem>>
    } else {
    }
    return
  }
  func.func @transform_0(%arg0: i32, %arg1: i32) -> (i32, i32, i32) {
    %c5_i32 = arith.constant 5 : i32
    %0 = arith.muli %arg0, %c5_i32 : i32
    %c4_i32 = arith.constant 4 : i32
    %1 = arith.addi %0, %c4_i32 : i32
    %c0_i32 = arith.constant 0 : i32
    %c0_i32_0 = arith.constant 0 : i32
    return %1, %arg1, %c0_i32 : i32, i32, i32
  }
  func.func @transform_1(%arg0: i32, %arg1: i32) -> (i32, i32, i32) {
    %c0_i32 = arith.constant 0 : i32
    %c0_i32_0 = arith.constant 0 : i32
    return %arg0, %arg1, %c0_i32 : i32, i32, i32
  }
  func.func @transform_2(%arg0: i32, %arg1: i32) -> (i32, i32) {
    %c0_i32 = arith.constant 0 : i32
    %c0_i32_0 = arith.constant 0 : i32
    %c0_i32_1 = arith.constant 0 : i32
    return %c0_i32, %c0_i32_0 : i32, i32
  }
}

</mosaic_0001>

<bundles_post_ra>
// kernel: loss_simple_rlsp.1
= control target key start
LH: loop header
LB: loop body
LE: loop exit
PB: predicated region body
PF: predicated region fallthrough
CT: control target
= control target key end

     0   :  { %7 = vsyncpa [#allocation3], 0  ;;  %s426_s9 = smov 0   ;;  %s428_s10 = smov 0   ;;  %s493_s0 = inlined_call_operand.vmem [shape: f32[10,6,128], index: 0, kind: input, shape index: {}]   ;;  %s494_s1 = inlined_call_operand.vmem [shape: f32[2,6,128], index: 1, kind: input, shape index: {}]   ;;  %s495_s2 = inlined_call_operand.hbm [shape: f32[1,1], index: 2, kind: output, shape index: {}]  }
   0x1   :  { %s430_s11 = smov 0  }
   0x2 LB: > { %s319_s12 = sadd.s32 4294967295, %s407_s11   ;;  %s25_s13 = sadd.s32 1, %s403_s10  ;;  %s407_s11 = sphi %s430_s11, %s13_s11   ;;  %s403_s10 = sphi %s428_s10, %s498_s10   ;;  %s399_s9 = sphi %s426_s9, %s497_s9  }
   0x3   : > { %p27_p0 = scmp.ge.s32.totalorder %s25_s13, 2  ;;  %p322_p1 = scmp.ge.s32.totalorder %s407_s11, 1 }
   0x4   : > { %p146_p2 = scmp.lt.s32.totalorder %s407_s11, 3 }
   0x5   : > { %s500_s13 = smov (%p27_p0, %s25_s13), 0 }
   0x6   : > { %p147_p3 = pnand %p322_p1, %p146_p2 }
   0x7   : > { %s174_s14 = smul.u32 (!%p147_p3), 5, %s399_s9  ;;  %p185_p4 = scmp.lt.s32.totalorder (!%p147_p3), %s399_s9, 1  ;;  %v202_v0 = vlaneseq (!%p147_p3)  ;;  %vm225_vm6 = vcmask (!%p147_p3), 1045504  }
   0x8   : > { %150 = sbr.rel (%p147_p3) target bundleno = 242 (0xf2), region = 28  ;;  %p192_p6 = scmp.eq.s32.totalorder (!%p147_p3), %s399_s9, 0 }
   0x9   : > { %s175_s15 = sadd.s32 (!%p147_p3), 4, %s174_s14  ;;  %v203_v1 = vshrl.u32 (!%p147_p3), %v202_v0, 7  ;;  %v208_v2 = vand.u32 (!%p147_p3), 127, %v202_v0  ;;  %s409_s25 = smov (!%p147_p3), 0.0  }
   0xa   : > { %p176_p5 = scmp.lt.s32.totalorder (!%p147_p3), %s175_s15, 9  ;;  %p239_p7 = scmp.eq.s32.totalorder (!%p147_p3), %s399_s9, 1 }
   0xb   : > { %v209_v3 = vmul.u32 (!%p147_p3), 128, %v203_v1  ;;  %p460_p8 = scmp.eq.s32.totalorder (!%p147_p3), %s319_s12, 1  ;;  %s369_s5 = scalar_lea.hbm (!%p147_p3), %s495_s2, 16 }
   0xc   : > { %p370_p9 = scmp.ne.s32.totalorder (!%p147_p3), %s495_s2, %s369_s5  ;;  %p375_p12 = scmp.lt.u32.totalorder (!%p147_p3), %s369_s5, %s495_s2 }
   0xd   : > { %v210_v4 = vadd.s32 (!%p147_p3), %v209_v3, %v208_v2 }
   0xe   : > { %p371_p10 = pnand (!%p147_p3), %p370_p9, %p460_p8 }
   0xf   : > { %s186_s16 = scalar_select %p185_p4, %s399_s9, 1  ;;  %v211_v6 = vshra.s32 %v210_v4, 4  ;;  %v212_v7 = vand.u32 15, %v210_v4 }
  0x10   : > { %s502_s15 = smov (!%p176_p5, %s175_s15), 9  ;;  %335 = sst [smem:[#allocation2]] (%p192_p6), %s409_s25 }
  0x11   : > { %s324_s17 = sshll.u32 %s186_s16, 3  ;;  %s323_s18 = sshll.u32 %s502_s15, 3  ;;  %v213_v9 = vand.u32 15, %v211_v6  ;;  %vm217_vm0 = vcmp.ge.s32.totalorder %v212_v7, 2  ;;  %vm219_vm3 = vcmp.lt.s32.totalorder %v212_v7, 14 }
  0x12   : > { %s191_s21 = scalar_lea.vmem %s494_s1, %s324_s17  ;;  %s182_s24 = scalar_lea.vmem %s493_s0, %s323_s18 }
  0x13   : > { %v201_v5 = vld [vmem:[%s191_s21] sm:$0x3f]  ;;  %vm214_vm1 = vcmp.ge.s32.totalorder %v213_v9, 2  ;;  %vm215_vm2 = vcmp.lt.s32.totalorder %v213_v9, 14  ;;  %s221_s26 = sld [smem:[#allocation2]]  ;;  %p372_p11 = pneg %p371_p10 }
  0x14   : > { %v200_v8 = vld [vmem:[%s182_s24] sm:$0x3f]  ;;  %vm216_vm4 = vmand %vm214_vm1, %vm215_vm2 }
  0x15   : > { %v222_v10 = vsub.f32 %v200_v8, %v201_v5  ;;  %vm218_vm5 = vmand %vm216_vm4, %vm217_vm0  ;;  %p377_p13 = pnand %p375_p12, %p372_p11 }
  0x16   : > { %vm220_vm7 = vmand %vm218_vm5, %vm219_vm3 }
  0x17   : > { %v223_v11 = vand.u32 2147483647, %v222_v10 }
  0x19   : > { %v224_v12 = vsel %vm220_vm7, %v223_v11, 0.0 }
  0x1a   : > { %v226_v13 = vsel %vm225_vm6, %v224_v12, 0.0 }
  0x1b   : > { %227 = vadd.xlane.f32.xlu0 %v226_v13 }
  0xa8   : > { %v228_v14 = vpop.xlane.xlu0 %227 }
  0xa9   : > { %v229_v15 = vrot.slane %v228_v14, 4 }
  0xab   : > { %v230_v16 = vadd.f32 %v229_v15, %v228_v14 }
  0xad   : > { %v231_v17 = vrot.slane %v230_v16, 2 }
  0xaf   : > { %v232_v18 = vadd.f32 %v231_v17, %v230_v16 }
  0xb1   : > { %v233_v19 = vrot.slane %v232_v18, 1 }
  0xb3   : > { %v234_v20 = vadd.f32 %v233_v19, %v232_v18 }
  0xb5   : > { %333 = vpush %v234_v20 }
  0xe6   : > { %s334_s27 = spop %333 }
  0xe7   : > { %s236_s28 = sadd.f32 %s334_s27, %s221_s26 }
  0xe9   : > { %238 = sst [smem:[#allocation2]] %s236_s28  ;;  %s245_s30 = smul.f32 0.11574074, %s236_s28 }
  0xeb   : > { %336 = sst [smem:[#allocation2]] (%p239_p7), %s245_s30 }
  0xec   : > { %380 = shalt.err (!%p377_p13)
}
  0xed   : > { %s410_s12 = smov [#allocation2]  }
  0xee   : > { %338 = dma.smem_to_hbm (%p460_p8), %s410_s12, 16, %s495_s2, [#allocation3]  }
  0xef   : > { %394 = dma.done.wait (%p460_p8), [#allocation3], 16  }
  0xf0   : > { %396 = vsyncadd (%p460_p8), [#allocation3], 4294967280 }
  0xf1   : > { %260 = sfence }
  0xf2 PF: > { %s13_s11 = sadd.s32 1, %s407_s11   ;;  %s497_s9 = smov %s403_s10 }
  0xf3   : > { %p10_p0 = scmp.ge.s32.totalorder %s13_s11, 4   ;;  %s498_s10 = smov %s500_s13 }
  0xf5   :  { %12 = sbr.rel (!%p10_p0) target bundleno = 2 (0x2), region = 68 }
  0xfc   :  { %266 = vsyncpa [#allocation3], 1 }
  0xfd   :  { %268 = vsyncpa [#allocation3 + $0x1], 1 }

</bundles_post_ra>
